<compile_context>
chip_gen: v5e
topology: v5e:2x2
jax: 0.10.0
libtpu: 0.0.40
codegen_flags: <defaults>
</compile_context>

<pallas_src>
import jax
import jax.numpy as jnp
from jax import lax
from jax.experimental import pallas as pl
from jax.experimental.pallas import tpu as pltpu


# ------------------------- Pallas kernel -----------------------------------


def audio_att_kernel(x_ref,
                     w1_ref, b1_ref, w2_ref, b2_ref, w3_ref, b3_ref,
                     w4_ref, b4_ref, w5_ref, b5_ref,
                     wbd_ref, blf_ref, out_ref):
    Bt, S, D = x_ref.shape
    M = Bt * S

    x3 = x_ref[...]                      # [Bt, S, D]
    h = x3.reshape(M, D)                 # flatten (batch, seq) onto sublanes

    # Sequence-edge masks for the conv boundaries (padding=1 -> zero taps).
    # Computed once, reused by all 5 conv layers.
    pos = lax.broadcasted_iota(jnp.int32, (M, 1), 0) % S
    first = pos == 0                     # row is seq position 0 of its group
    last = pos == S - 1                  # row is seq position S-1 of its group

    def conv_leaky(h, w_ref, b_ref):
        # Fused-tap Conv1d(kernel=3, padding=1) along the sequence axis:
        # one MXU matmul produces all three tap outputs side by side, then the
        # k=0 / k=2 taps are shifted by +-1 row (pltpu.roll on the XLU) and the
        # wrapped rows at sequence-group edges are masked to zero.
        cout = b_ref.shape[-1]
        y = jnp.dot(h, w_ref[...], preferred_element_type=jnp.float32)  # [M, 3*Cout]
        y_prev = jnp.where(first, 0.0,
                           pltpu.roll(y[:, :cout], shift=1, axis=0))
        y_mid = y[:, cout:2 * cout]
        y_next = jnp.where(last, 0.0,
                           pltpu.roll(y[:, 2 * cout:], shift=M - 1, axis=0))
        z = y_prev + y_mid + y_next + b_ref[...]
        return jnp.where(z > 0, z, 0.02 * z)       # LeakyReLU(0.02)

    # --- attention_conv_net: 5 x (Conv1d k=3 p=1 + LeakyReLU) ---------------
    h = conv_leaky(h, w1_ref, b1_ref)    # [M, 16]
    h = conv_leaky(h, w2_ref, b2_ref)    # [M, 8]
    h = conv_leaky(h, w3_ref, b3_ref)    # [M, 4]
    h = conv_leaky(h, w4_ref, b4_ref)    # [M, 2]
    h = conv_leaky(h, w5_ref, b5_ref)    # [M, 1]

    # --- attention_net: Linear(S->S) per sequence group (block-diagonal MXU
    # matmul on the flat layout) + numerically-stable softmax over S ----------
    z = jnp.dot(wbd_ref[...], h, preferred_element_type=jnp.float32) + blf_ref[...]
    z3 = z.reshape(Bt, S, 1)             # cheap: splits leading dim only
    m = jnp.max(z3, axis=1, keepdims=True)
    e = jnp.exp(z3 - m)
    att = e * pl.reciprocal(jnp.sum(e, axis=1, keepdims=True), approx=True)

    # --- weighted temporal sum: out[b, d] = sum_s att[b, s] * x[b, s, d] -----
    out_ref[...] = jnp.sum(att * x3, axis=1)       # [Bt, D]


# ------------------------- Wrapper ------------------------------------------


def audio_att_net(x, params, block_b=None):
    """x: [B, S, D] float32 -> [B, D] float32."""
    B, S, D = x.shape
    (w1, b1), (w2, b2), (w3, b3), (w4, b4), (w5, b5), (wl, bl) = params

    if block_b is None:
        # Handle the whole batch in one grid step when it is small (fewer
        # per-step overheads); otherwise use Bt = 32 so M = Bt*S = 256 rows
        # per step (MXU-friendly), with the batch axis sharded across
        # TensorCores (v7x megacore). Bt is then either the full (padded)
        # batch or a multiple of 8, keeping the (Bt, D) output block legal.
        block_b = 32
    Bt = int(min(block_b, B))
    nblk = pl.cdiv(B, Bt)
    Bpad = nblk * Bt
    if Bpad != B:
        # Zero-pad the batch to a multiple of the block; padded rows are
        # numerically benign (softmax of finite logits, output sliced away).
        x = jnp.concatenate([x, jnp.zeros((Bpad - B, S, D), x.dtype)], axis=0)

    def repack_conv(w, b):
        # PyTorch conv weight [Cout, Cin, 3] -> fused-tap weight [Cin, 3*Cout]
        # (column k*Cout + o holds tap k, output channel o); bias -> [1, Cout].
        cout, cin, _ = w.shape
        w_all = jnp.transpose(w, (1, 2, 0)).reshape(cin, 3 * cout)
        return w_all.astype(jnp.float32), b.reshape(1, cout).astype(jnp.float32)

    wa1, kb1 = repack_conv(w1, b1)
    wa2, kb2 = repack_conv(w2, b2)
    wa3, kb3 = repack_conv(w3, b3)
    wa4, kb4 = repack_conv(w4, b4)
    wa5, kb5 = repack_conv(w5, b5)

    # attention_net Linear(S->S) as a block-diagonal matrix over the flattened
    # (Bt, S) rows, plus its tiled bias. M <= 256 so this is <= 256 KB and is
    # DMA'd once (constant index_map), then stays resident in VMEM.
    M = Bt * S
    wbd = jnp.kron(jnp.eye(Bt, dtype=jnp.float32), wl.astype(jnp.float32))  # [M, M]
    blf = jnp.tile(bl.reshape(1, S).astype(jnp.float32), (Bt, 1)).reshape(M, 1)

    full = lambda a: pl.BlockSpec(a.shape, lambda i, n=a.ndim: (0,) * n)

    grid_spec = pltpu.PrefetchScalarGridSpec(
        num_scalar_prefetch=0,
        grid=(nblk,),
        in_specs=[
            pl.BlockSpec((Bt, S, D), lambda i: (i, 0, 0)),   # x block
            full(wa1), full(kb1),
            full(wa2), full(kb2),
            full(wa3), full(kb3),
            full(wa4), full(kb4),
            full(wa5), full(kb5),
            full(wbd), full(blf),
        ],
        out_specs=pl.BlockSpec((Bt, D), lambda i: (i, 0)),
    )

    out = pl.pallas_call(
        audio_att_kernel,
        out_shape=jax.ShapeDtypeStruct((Bpad, D), jnp.float32),
        grid_spec=grid_spec,
        compiler_params=pltpu.CompilerParams(dimension_semantics=("parallel",)),
    )(x, wa1, kb1, wa2, kb2, wa3, kb3, wa4, kb4, wa5, kb5, wbd, blf)
    return out[:B]


# ------------------------- Pure-JAX reference -------------------------------


def reference(x, params):
    (w1, b1), (w2, b2), (w3, b3), (w4, b4), (w5, b5), (wl, bl) = params
    B, S, D = x.shape
    y = jnp.transpose(x, (0, 2, 1))  # [B, C=D, L=S]

    def conv1d(h, w, b):  # h [B,Cin,L], w [Cout,Cin,3], b [Cout]
        hp = jnp.pad(h, ((0, 0), (0, 0), (1, 1)))
        L = h.shape[2]
        out = b[None, :, None]
        for k in range(3):
            out = out + jnp.einsum("oc,bcl->bol", w[:, :, k], hp[:, :, k:k + L])
        return jnp.where(out > 0, out, 0.02 * out)

    y = conv1d(y, w1, b1)
    y = conv1d(y, w2, b2)
    y = conv1d(y, w3, b3)
    y = conv1d(y, w4, b4)
    y = conv1d(y, w5, b5)              # [B, 1, S]
    y = y.reshape(B, S)
    z = y @ wl.T + bl                  # Linear(S, S)
    att = jax.nn.softmax(z, axis=1)    # [B, S]
    return jnp.sum(att[:, :, None] * x, axis=1)  # [B, D]


# ------------------------- Main ----------------------------------------------


if __name__ == "__main__":
    DIM_AUD = 64
    SEQ_LEN = 8
    BATCH = 2

    key = jax.random.PRNGKey(0)
    keys = jax.random.split(key, 16)

    def init_conv(k, cout, cin):
        kw, kb = jax.random.split(k)
        w = jax.random.normal(kw, (cout, cin, 3), jnp.float32) * 0.2
        b = jax.random.normal(kb, (cout,), jnp.float32) * 0.1
        return w, b

    params = (
        init_conv(keys[0], 16, DIM_AUD),
        init_conv(keys[1], 8, 16),
        init_conv(keys[2], 4, 8),
        init_conv(keys[3], 2, 4),
        init_conv(keys[4], 1, 2),
        (
            jax.random.normal(keys[5], (SEQ_LEN, SEQ_LEN), jnp.float32) * 0.3,
            jax.random.normal(keys[6], (SEQ_LEN,), jnp.float32) * 0.1,
        ),
    )

    x = jax.random.normal(keys[7], (BATCH, SEQ_LEN, DIM_AUD), jnp.float32)

    out = audio_att_net(x, params)
    out = jax.block_until_ready(out)

    ref = reference(x, params)
    assert out.shape == (BATCH, DIM_AUD)
    err = jnp.max(jnp.abs(out - ref))
    # Tolerance allows for the EUP approximate reciprocal in the softmax
    # normalization and the fused-tap summation order; real bugs (wrong taps,
    # weights, softmax) would produce O(0.1+) errors.
    if not jnp.allclose(out, ref, atol=1e-3, rtol=1e-3):
        raise AssertionError(f"mismatch vs reference: max err {err}")

    print("KERNEL_OK")
</pallas_src>

<mosaic_0001>
module attributes {stable_mosaic.version = 11 : i64} {
  func.func @audio_att_kernel(%arg0: i32, %arg1: memref<2x8x64xf32, #tpu.memory_space<vmem>>, %arg2: memref<64x48xf32, #tpu.memory_space<vmem>>, %arg3: memref<1x16xf32, #tpu.memory_space<vmem>>, %arg4: memref<16x24xf32, #tpu.memory_space<vmem>>, %arg5: memref<1x8xf32, #tpu.memory_space<vmem>>, %arg6: memref<8x12xf32, #tpu.memory_space<vmem>>, %arg7: memref<1x4xf32, #tpu.memory_space<vmem>>, %arg8: memref<4x6xf32, #tpu.memory_space<vmem>>, %arg9: memref<1x2xf32, #tpu.memory_space<vmem>>, %arg10: memref<2x3xf32, #tpu.memory_space<vmem>>, %arg11: memref<1x1xf32, #tpu.memory_space<vmem>>, %arg12: memref<16x16xf32, #tpu.memory_space<vmem>>, %arg13: memref<16x1xf32, #tpu.memory_space<vmem>>, %arg14: memref<2x64xf32, #tpu.memory_space<vmem>>) attributes {dimension_semantics = [#tpu.dimension_semantics<parallel>], iteration_bounds = array<i64: 1>, scalar_prefetch = 0 : i64, scratch_operands = 0 : i64, tpu.core_type = #tpu.core_type<tc>, window_params = [{transform_indices = @transform_0, window_bounds = array<i64: 2, 8, 64>}, {pipeline_mode = #tpu.pipeline_mode<synchronous>, transform_indices = @transform_1, window_bounds = array<i64: 64, 48>}, {pipeline_mode = #tpu.pipeline_mode<synchronous>, transform_indices = @transform_2, window_bounds = array<i64: 1, 16>}, {pipeline_mode = #tpu.pipeline_mode<synchronous>, transform_indices = @transform_3, window_bounds = array<i64: 16, 24>}, {pipeline_mode = #tpu.pipeline_mode<synchronous>, transform_indices = @transform_4, window_bounds = array<i64: 1, 8>}, {pipeline_mode = #tpu.pipeline_mode<synchronous>, transform_indices = @transform_5, window_bounds = array<i64: 8, 12>}, {pipeline_mode = #tpu.pipeline_mode<synchronous>, transform_indices = @transform_6, window_bounds = array<i64: 1, 4>}, {pipeline_mode = #tpu.pipeline_mode<synchronous>, transform_indices = @transform_7, window_bounds = array<i64: 4, 6>}, {pipeline_mode = #tpu.pipeline_mode<synchronous>, transform_indices = @transform_8, window_bounds = array<i64: 1, 2>}, {pipeline_mode = #tpu.pipeline_mode<synchronous>, transform_indices = @transform_9, window_bounds = array<i64: 2, 3>}, {pipeline_mode = #tpu.pipeline_mode<synchronous>, transform_indices = @transform_10, window_bounds = array<i64: 1, 1>}, {pipeline_mode = #tpu.pipeline_mode<synchronous>, transform_indices = @transform_11, window_bounds = array<i64: 16, 16>}, {pipeline_mode = #tpu.pipeline_mode<synchronous>, transform_indices = @transform_12, window_bounds = array<i64: 16, 1>}, {transform_indices = @transform_13, window_bounds = array<i64: 2, 64>}]} {
    %c0 = arith.constant 0 : index
    %c0_0 = arith.constant 0 : index
    %c0_1 = arith.constant 0 : index
    %0 = vector.load %arg1[%c0, %c0_0, %c0_1] : memref<2x8x64xf32, #tpu.memory_space<vmem>>, vector<2x8x64xf32>
    %1 = vector.shape_cast %0 : vector<2x8x64xf32> to vector<16x64xf32>
    %2 = tpu.iota {dimensions = array<i32: 0>} : vector<16x1xi32>
    %c8_i32 = arith.constant 8 : i32
    %c0_i32 = arith.constant 0 : i32
    %3 = arith.cmpi eq, %c8_i32, %c0_i32 : i32
    %c1_i32 = arith.constant 1 : i32
    %4 = arith.select %3, %c1_i32, %c8_i32 : i32
    %5 = vector.broadcast %4 : i32 to vector<16x1xi32>
    %6 = arith.remsi %2, %5 : vector<16x1xi32>
    %c0_i32_2 = arith.constant 0 : i32
    %7 = vector.broadcast %c0_i32_2 : i32 to vector<16x1xi32>
    %8 = arith.cmpi ne, %6, %7 : vector<16x1xi32>
    %c0_i32_3 = arith.constant 0 : i32
    %9 = vector.broadcast %c0_i32_3 : i32 to vector<16x1xi32>
    %10 = arith.cmpi slt, %6, %9 : vector<16x1xi32>
    %c0_i32_4 = arith.constant 0 : i32
    %11 = arith.cmpi slt, %4, %c0_i32_4 : i32
    %12 = vector.broadcast %11 : i1 to vector<16x1xi1>
    %13 = vector.broadcast %12 : vector<16x1xi1> to vector<16x1xi1>
    %14 = arith.xori %10, %13 : vector<16x1xi1>
    %15 = arith.andi %14, %8 : vector<16x1xi1>
    %16 = vector.broadcast %4 : i32 to vector<16x1xi32>
    %17 = arith.addi %6, %16 : vector<16x1xi32>
    %18 = arith.select %15, %17, %6 : vector<16x1xi1>, vector<16x1xi32>
    %c0_i32_5 = arith.constant 0 : i32
    %19 = vector.broadcast %c0_i32_5 : i32 to vector<16x1xi32>
    %20 = arith.cmpi eq, %18, %19 : vector<16x1xi32>
    %c7_i32 = arith.constant 7 : i32
    %21 = vector.broadcast %c7_i32 : i32 to vector<16x1xi32>
    %22 = arith.cmpi eq, %18, %21 : vector<16x1xi32>
    %c0_6 = arith.constant 0 : index
    %c0_7 = arith.constant 0 : index
    %23 = vector.load %arg2[%c0_6, %c0_7] : memref<64x48xf32, #tpu.memory_space<vmem>>, vector<64x48xf32>
    %cst = arith.constant dense<0.000000e+00> : vector<16x48xf32>
    %24 = tpu.matmul %1, %23, %cst {dimension_numbers = #tpu.dot_dimension_numbers<[1], [0], [0], [1], [0, 0, 1, 1], [], []>} : vector<16x64xf32>, vector<64x48xf32>, vector<16x48xf32> -> vector<16x48xf32>
    %25 = vector.extract_strided_slice %24 {offsets = [0, 0], sizes = [16, 16], strides = [1, 1]} : vector<16x48xf32> to vector<16x16xf32>
    %c1_i32_8 = arith.constant 1 : i32
    %26 = tpu.dynamic_rotate %25 by %c1_i32_8 dim 0 : vector<16x16xf32>, i32 -> vector<16x16xf32>
    %cst_9 = arith.constant 0.000000e+00 : f32
    %27 = vector.shape_cast %20 : vector<16x1xi1> to vector<16x1xi1>
    %28 = vector.broadcast %27 : vector<16x1xi1> to vector<16x16xi1>
    %29 = vector.broadcast %cst_9 : f32 to vector<16x16xf32>
    %30 = arith.select %28, %29, %26 : vector<16x16xi1>, vector<16x16xf32>
    %31 = vector.extract_strided_slice %24 {offsets = [0, 16], sizes = [16, 16], strides = [1, 1]} : vector<16x48xf32> to vector<16x16xf32>
    %32 = vector.extract_strided_slice %24 {offsets = [0, 32], sizes = [16, 16], strides = [1, 1]} : vector<16x48xf32> to vector<16x16xf32>
    %c15_i32 = arith.constant 15 : i32
    %33 = tpu.dynamic_rotate %32 by %c15_i32 dim 0 : vector<16x16xf32>, i32 -> vector<16x16xf32>
    %cst_10 = arith.constant 0.000000e+00 : f32
    %34 = vector.shape_cast %22 : vector<16x1xi1> to vector<16x1xi1>
    %35 = vector.broadcast %34 : vector<16x1xi1> to vector<16x16xi1>
    %36 = vector.broadcast %cst_10 : f32 to vector<16x16xf32>
    %37 = arith.select %35, %36, %33 : vector<16x16xi1>, vector<16x16xf32>
    %38 = arith.addf %30, %31 : vector<16x16xf32>
    %39 = arith.addf %38, %37 : vector<16x16xf32>
    %c0_11 = arith.constant 0 : index
    %c0_12 = arith.constant 0 : index
    %40 = vector.load %arg3[%c0_11, %c0_12] : memref<1x16xf32, #tpu.memory_space<vmem>>, vector<1x16xf32>
    %41 = vector.broadcast %40 : vector<1x16xf32> to vector<16x16xf32>
    %42 = arith.addf %39, %41 : vector<16x16xf32>
    %cst_13 = arith.constant 0.000000e+00 : f32
    %43 = vector.broadcast %cst_13 : f32 to vector<16x16xf32>
    %44 = arith.cmpf ogt, %42, %43 : vector<16x16xf32>
    %cst_14 = arith.constant 2.000000e-02 : f32
    %45 = vector.broadcast %cst_14 : f32 to vector<16x16xf32>
    %46 = arith.mulf %45, %42 : vector<16x16xf32>
    %47 = arith.select %44, %42, %46 : vector<16x16xi1>, vector<16x16xf32>
    %c0_15 = arith.constant 0 : index
    %c0_16 = arith.constant 0 : index
    %48 = vector.load %arg4[%c0_15, %c0_16] : memref<16x24xf32, #tpu.memory_space<vmem>>, vector<16x24xf32>
    %cst_17 = arith.constant dense<0.000000e+00> : vector<16x24xf32>
    %49 = tpu.matmul %47, %48, %cst_17 {dimension_numbers = #tpu.dot_dimension_numbers<[1], [0], [0], [1], [0, 0, 1, 1], [], []>} : vector<16x16xf32>, vector<16x24xf32>, vector<16x24xf32> -> vector<16x24xf32>
    %50 = vector.extract_strided_slice %49 {offsets = [0, 0], sizes = [16, 8], strides = [1, 1]} : vector<16x24xf32> to vector<16x8xf32>
    %c1_i32_18 = arith.constant 1 : i32
    %51 = tpu.dynamic_rotate %50 by %c1_i32_18 dim 0 : vector<16x8xf32>, i32 -> vector<16x8xf32>
    %cst_19 = arith.constant 0.000000e+00 : f32
    %52 = vector.shape_cast %20 : vector<16x1xi1> to vector<16x1xi1>
    %53 = vector.broadcast %52 : vector<16x1xi1> to vector<16x8xi1>
    %54 = vector.broadcast %cst_19 : f32 to vector<16x8xf32>
    %55 = arith.select %53, %54, %51 : vector<16x8xi1>, vector<16x8xf32>
    %56 = vector.extract_strided_slice %49 {offsets = [0, 8], sizes = [16, 8], strides = [1, 1]} : vector<16x24xf32> to vector<16x8xf32>
    %57 = vector.extract_strided_slice %49 {offsets = [0, 16], sizes = [16, 8], strides = [1, 1]} : vector<16x24xf32> to vector<16x8xf32>
    %c15_i32_20 = arith.constant 15 : i32
    %58 = tpu.dynamic_rotate %57 by %c15_i32_20 dim 0 : vector<16x8xf32>, i32 -> vector<16x8xf32>
    %cst_21 = arith.constant 0.000000e+00 : f32
    %59 = vector.shape_cast %22 : vector<16x1xi1> to vector<16x1xi1>
    %60 = vector.broadcast %59 : vector<16x1xi1> to vector<16x8xi1>
    %61 = vector.broadcast %cst_21 : f32 to vector<16x8xf32>
    %62 = arith.select %60, %61, %58 : vector<16x8xi1>, vector<16x8xf32>
    %63 = arith.addf %55, %56 : vector<16x8xf32>
    %64 = arith.addf %63, %62 : vector<16x8xf32>
    %c0_22 = arith.constant 0 : index
    %c0_23 = arith.constant 0 : index
    %65 = vector.load %arg5[%c0_22, %c0_23] : memref<1x8xf32, #tpu.memory_space<vmem>>, vector<1x8xf32>
    %66 = vector.broadcast %65 : vector<1x8xf32> to vector<16x8xf32>
    %67 = arith.addf %64, %66 : vector<16x8xf32>
    %cst_24 = arith.constant 0.000000e+00 : f32
    %68 = vector.broadcast %cst_24 : f32 to vector<16x8xf32>
    %69 = arith.cmpf ogt, %67, %68 : vector<16x8xf32>
    %cst_25 = arith.constant 2.000000e-02 : f32
    %70 = vector.broadcast %cst_25 : f32 to vector<16x8xf32>
    %71 = arith.mulf %70, %67 : vector<16x8xf32>
    %72 = arith.select %69, %67, %71 : vector<16x8xi1>, vector<16x8xf32>
    %c0_26 = arith.constant 0 : index
    %c0_27 = arith.constant 0 : index
    %73 = vector.load %arg6[%c0_26, %c0_27] : memref<8x12xf32, #tpu.memory_space<vmem>>, vector<8x12xf32>
    %cst_28 = arith.constant dense<0.000000e+00> : vector<16x12xf32>
    %74 = tpu.matmul %72, %73, %cst_28 {dimension_numbers = #tpu.dot_dimension_numbers<[1], [0], [0], [1], [0, 0, 1, 1], [], []>} : vector<16x8xf32>, vector<8x12xf32>, vector<16x12xf32> -> vector<16x12xf32>
    %75 = vector.extract_strided_slice %74 {offsets = [0, 0], sizes = [16, 4], strides = [1, 1]} : vector<16x12xf32> to vector<16x4xf32>
    %c1_i32_29 = arith.constant 1 : i32
    %76 = tpu.dynamic_rotate %75 by %c1_i32_29 dim 0 : vector<16x4xf32>, i32 -> vector<16x4xf32>
    %cst_30 = arith.constant 0.000000e+00 : f32
    %77 = vector.shape_cast %20 : vector<16x1xi1> to vector<16x1xi1>
    %78 = vector.broadcast %77 : vector<16x1xi1> to vector<16x4xi1>
    %79 = vector.broadcast %cst_30 : f32 to vector<16x4xf32>
    %80 = arith.select %78, %79, %76 : vector<16x4xi1>, vector<16x4xf32>
    %81 = vector.extract_strided_slice %74 {offsets = [0, 4], sizes = [16, 4], strides = [1, 1]} : vector<16x12xf32> to vector<16x4xf32>
    %82 = vector.extract_strided_slice %74 {offsets = [0, 8], sizes = [16, 4], strides = [1, 1]} : vector<16x12xf32> to vector<16x4xf32>
    %c15_i32_31 = arith.constant 15 : i32
    %83 = tpu.dynamic_rotate %82 by %c15_i32_31 dim 0 : vector<16x4xf32>, i32 -> vector<16x4xf32>
    %cst_32 = arith.constant 0.000000e+00 : f32
    %84 = vector.shape_cast %22 : vector<16x1xi1> to vector<16x1xi1>
    %85 = vector.broadcast %84 : vector<16x1xi1> to vector<16x4xi1>
    %86 = vector.broadcast %cst_32 : f32 to vector<16x4xf32>
    %87 = arith.select %85, %86, %83 : vector<16x4xi1>, vector<16x4xf32>
    %88 = arith.addf %80, %81 : vector<16x4xf32>
    %89 = arith.addf %88, %87 : vector<16x4xf32>
    %c0_33 = arith.constant 0 : index
    %c0_34 = arith.constant 0 : index
    %90 = vector.load %arg7[%c0_33, %c0_34] : memref<1x4xf32, #tpu.memory_space<vmem>>, vector<1x4xf32>
    %91 = vector.broadcast %90 : vector<1x4xf32> to vector<16x4xf32>
    %92 = arith.addf %89, %91 : vector<16x4xf32>
    %cst_35 = arith.constant 0.000000e+00 : f32
    %93 = vector.broadcast %cst_35 : f32 to vector<16x4xf32>
    %94 = arith.cmpf ogt, %92, %93 : vector<16x4xf32>
    %cst_36 = arith.constant 2.000000e-02 : f32
    %95 = vector.broadcast %cst_36 : f32 to vector<16x4xf32>
    %96 = arith.mulf %95, %92 : vector<16x4xf32>
    %97 = arith.select %94, %92, %96 : vector<16x4xi1>, vector<16x4xf32>
    %c0_37 = arith.constant 0 : index
    %c0_38 = arith.constant 0 : index
    %98 = vector.load %arg8[%c0_37, %c0_38] : memref<4x6xf32, #tpu.memory_space<vmem>>, vector<4x6xf32>
    %cst_39 = arith.constant dense<0.000000e+00> : vector<16x6xf32>
    %99 = tpu.matmul %97, %98, %cst_39 {dimension_numbers = #tpu.dot_dimension_numbers<[1], [0], [0], [1], [0, 0, 1, 1], [], []>} : vector<16x4xf32>, vector<4x6xf32>, vector<16x6xf32> -> vector<16x6xf32>
    %100 = vector.extract_strided_slice %99 {offsets = [0, 0], sizes = [16, 2], strides = [1, 1]} : vector<16x6xf32> to vector<16x2xf32>
    %c1_i32_40 = arith.constant 1 : i32
    %101 = tpu.dynamic_rotate %100 by %c1_i32_40 dim 0 : vector<16x2xf32>, i32 -> vector<16x2xf32>
    %cst_41 = arith.constant 0.000000e+00 : f32
    %102 = vector.shape_cast %20 : vector<16x1xi1> to vector<16x1xi1>
    %103 = vector.broadcast %102 : vector<16x1xi1> to vector<16x2xi1>
    %104 = vector.broadcast %cst_41 : f32 to vector<16x2xf32>
    %105 = arith.select %103, %104, %101 : vector<16x2xi1>, vector<16x2xf32>
    %106 = vector.extract_strided_slice %99 {offsets = [0, 2], sizes = [16, 2], strides = [1, 1]} : vector<16x6xf32> to vector<16x2xf32>
    %107 = vector.extract_strided_slice %99 {offsets = [0, 4], sizes = [16, 2], strides = [1, 1]} : vector<16x6xf32> to vector<16x2xf32>
    %c15_i32_42 = arith.constant 15 : i32
    %108 = tpu.dynamic_rotate %107 by %c15_i32_42 dim 0 : vector<16x2xf32>, i32 -> vector<16x2xf32>
    %cst_43 = arith.constant 0.000000e+00 : f32
    %109 = vector.shape_cast %22 : vector<16x1xi1> to vector<16x1xi1>
    %110 = vector.broadcast %109 : vector<16x1xi1> to vector<16x2xi1>
    %111 = vector.broadcast %cst_43 : f32 to vector<16x2xf32>
    %112 = arith.select %110, %111, %108 : vector<16x2xi1>, vector<16x2xf32>
    %113 = arith.addf %105, %106 : vector<16x2xf32>
    %114 = arith.addf %113, %112 : vector<16x2xf32>
    %c0_44 = arith.constant 0 : index
    %c0_45 = arith.constant 0 : index
    %115 = vector.load %arg9[%c0_44, %c0_45] : memref<1x2xf32, #tpu.memory_space<vmem>>, vector<1x2xf32>
    %116 = vector.broadcast %115 : vector<1x2xf32> to vector<16x2xf32>
    %117 = arith.addf %114, %116 : vector<16x2xf32>
    %cst_46 = arith.constant 0.000000e+00 : f32
    %118 = vector.broadcast %cst_46 : f32 to vector<16x2xf32>
    %119 = arith.cmpf ogt, %117, %118 : vector<16x2xf32>
    %cst_47 = arith.constant 2.000000e-02 : f32
    %120 = vector.broadcast %cst_47 : f32 to vector<16x2xf32>
    %121 = arith.mulf %120, %117 : vector<16x2xf32>
    %122 = arith.select %119, %117, %121 : vector<16x2xi1>, vector<16x2xf32>
    %c0_48 = arith.constant 0 : index
    %c0_49 = arith.constant 0 : index
    %123 = vector.load %arg10[%c0_48, %c0_49] : memref<2x3xf32, #tpu.memory_space<vmem>>, vector<2x3xf32>
    %cst_50 = arith.constant dense<0.000000e+00> : vector<16x3xf32>
    %124 = tpu.matmul %122, %123, %cst_50 {dimension_numbers = #tpu.dot_dimension_numbers<[1], [0], [0], [1], [0, 0, 1, 1], [], []>} : vector<16x2xf32>, vector<2x3xf32>, vector<16x3xf32> -> vector<16x3xf32>
    %125 = vector.extract_strided_slice %124 {offsets = [0, 0], sizes = [16, 1], strides = [1, 1]} : vector<16x3xf32> to vector<16x1xf32>
    %c1_i32_51 = arith.constant 1 : i32
    %126 = tpu.dynamic_rotate %125 by %c1_i32_51 dim 0 : vector<16x1xf32>, i32 -> vector<16x1xf32>
    %cst_52 = arith.constant 0.000000e+00 : f32
    %127 = vector.broadcast %cst_52 : f32 to vector<16x1xf32>
    %128 = arith.select %20, %127, %126 : vector<16x1xi1>, vector<16x1xf32>
    %129 = vector.extract_strided_slice %124 {offsets = [0, 1], sizes = [16, 1], strides = [1, 1]} : vector<16x3xf32> to vector<16x1xf32>
    %130 = vector.extract_strided_slice %124 {offsets = [0, 2], sizes = [16, 1], strides = [1, 1]} : vector<16x3xf32> to vector<16x1xf32>
    %c15_i32_53 = arith.constant 15 : i32
    %131 = tpu.dynamic_rotate %130 by %c15_i32_53 dim 0 : vector<16x1xf32>, i32 -> vector<16x1xf32>
    %cst_54 = arith.constant 0.000000e+00 : f32
    %132 = vector.broadcast %cst_54 : f32 to vector<16x1xf32>
    %133 = arith.select %22, %132, %131 : vector<16x1xi1>, vector<16x1xf32>
    %134 = arith.addf %128, %129 : vector<16x1xf32>
    %135 = arith.addf %134, %133 : vector<16x1xf32>
    %c0_55 = arith.constant 0 : index
    %c0_56 = arith.constant 0 : index
    %136 = vector.load %arg11[%c0_55, %c0_56] : memref<1x1xf32, #tpu.memory_space<vmem>>, vector<1x1xf32>
    %137 = vector.broadcast %136 : vector<1x1xf32> to vector<16x1xf32>
    %138 = arith.addf %135, %137 : vector<16x1xf32>
    %cst_57 = arith.constant 0.000000e+00 : f32
    %139 = vector.broadcast %cst_57 : f32 to vector<16x1xf32>
    %140 = arith.cmpf ogt, %138, %139 : vector<16x1xf32>
    %cst_58 = arith.constant 2.000000e-02 : f32
    %141 = vector.broadcast %cst_58 : f32 to vector<16x1xf32>
    %142 = arith.mulf %141, %138 : vector<16x1xf32>
    %143 = arith.select %140, %138, %142 : vector<16x1xi1>, vector<16x1xf32>
    %c0_59 = arith.constant 0 : index
    %c0_60 = arith.constant 0 : index
    %144 = vector.load %arg12[%c0_59, %c0_60] : memref<16x16xf32, #tpu.memory_space<vmem>>, vector<16x16xf32>
    %cst_61 = arith.constant dense<0.000000e+00> : vector<16x1xf32>
    %145 = tpu.matmul %144, %143, %cst_61 {dimension_numbers = #tpu.dot_dimension_numbers<[1], [0], [0], [1], [0, 0, 1, 1], [], []>} : vector<16x16xf32>, vector<16x1xf32>, vector<16x1xf32> -> vector<16x1xf32>
    %c0_62 = arith.constant 0 : index
    %c0_63 = arith.constant 0 : index
    %146 = vector.load %arg13[%c0_62, %c0_63] : memref<16x1xf32, #tpu.memory_space<vmem>>, vector<16x1xf32>
    %147 = arith.addf %145, %146 : vector<16x1xf32>
    %148 = vector.shape_cast %147 : vector<16x1xf32> to vector<2x8x1xf32>
    %cst_64 = arith.constant dense<0xFF800000> : vector<2x1xf32>
    %149 = vector.multi_reduction <maximumf>, %148, %cst_64 [1] : vector<2x8x1xf32> to vector<2x1xf32>
    %150 = vector.shape_cast %149 : vector<2x1xf32> to vector<2x1x1xf32>
    %151 = vector.broadcast %150 : vector<2x1x1xf32> to vector<2x8x1xf32>
    %152 = arith.subf %148, %151 : vector<2x8x1xf32>
    %153 = math.exp %152 : vector<2x8x1xf32>
    %cst_65 = arith.constant dense<0.000000e+00> : vector<2x1xf32>
    %154 = vector.multi_reduction <add>, %153, %cst_65 [1] : vector<2x8x1xf32> to vector<2x1xf32>
    %155 = vector.shape_cast %154 : vector<2x1xf32> to vector<2x1x1xf32>
    %156 = tpu.reciprocal %155 {approx = true} : vector<2x1x1xf32> -> vector<2x1x1xf32>
    %157 = vector.broadcast %156 : vector<2x1x1xf32> to vector<2x8x1xf32>
    %158 = arith.mulf %153, %157 : vector<2x8x1xf32>
    %159 = vector.broadcast %158 : vector<2x8x1xf32> to vector<2x8x64xf32>
    %160 = arith.mulf %159, %0 : vector<2x8x64xf32>
    %cst_66 = arith.constant dense<0.000000e+00> : vector<2x64xf32>
    %161 = vector.multi_reduction <add>, %160, %cst_66 [1] : vector<2x8x64xf32> to vector<2x64xf32>
    %c0_67 = arith.constant 0 : index
    %c0_68 = arith.constant 0 : index
    %162 = vector.load %arg14[%c0_67, %c0_68] : memref<2x64xf32, #tpu.memory_space<vmem>>, vector<2x64xf32>
    tpu.vector_store %arg14[%c0_67, %c0_68], %161 {strides = array<i32>} : memref<2x64xf32, #tpu.memory_space<vmem>>, vector<2x64xf32>,
    return
  }
  func.func @transform_0(%arg0: i32) -> (i32, i32, i32) {
    %c0_i32 = arith.constant 0 : i32
    %c0_i32_0 = arith.constant 0 : i32
    %c0_i32_1 = arith.constant 0 : i32
    return %arg0, %c0_i32, %c0_i32_0 : i32, i32, i32
  }
  func.func @transform_1(%arg0: i32) -> (i32, i32) {
    %c0_i32 = arith.constant 0 : i32
    %c0_i32_0 = arith.constant 0 : i32
    %c0_i32_1 = arith.constant 0 : i32
    return %c0_i32, %c0_i32_0 : i32, i32
  }
  func.func @transform_2(%arg0: i32) -> (i32, i32) {
    %c0_i32 = arith.constant 0 : i32
    %c0_i32_0 = arith.constant 0 : i32
    %c0_i32_1 = arith.constant 0 : i32
    return %c0_i32, %c0_i32_0 : i32, i32
  }
  func.func @transform_3(%arg0: i32) -> (i32, i32) {
    %c0_i32 = arith.constant 0 : i32
    %c0_i32_0 = arith.constant 0 : i32
    %c0_i32_1 = arith.constant 0 : i32
    return %c0_i32, %c0_i32_0 : i32, i32
  }
  func.func @transform_4(%arg0: i32) -> (i32, i32) {
    %c0_i32 = arith.constant 0 : i32
    %c0_i32_0 = arith.constant 0 : i32
    %c0_i32_1 = arith.constant 0 : i32
    return %c0_i32, %c0_i32_0 : i32, i32
  }
  func.func @transform_5(%arg0: i32) -> (i32, i32) {
    %c0_i32 = arith.constant 0 : i32
    %c0_i32_0 = arith.constant 0 : i32
    %c0_i32_1 = arith.constant 0 : i32
    return %c0_i32, %c0_i32_0 : i32, i32
  }
  func.func @transform_6(%arg0: i32) -> (i32, i32) {
    %c0_i32 = arith.constant 0 : i32
    %c0_i32_0 = arith.constant 0 : i32
    %c0_i32_1 = arith.constant 0 : i32
    return %c0_i32, %c0_i32_0 : i32, i32
  }
  func.func @transform_7(%arg0: i32) -> (i32, i32) {
    %c0_i32 = arith.constant 0 : i32
    %c0_i32_0 = arith.constant 0 : i32
    %c0_i32_1 = arith.constant 0 : i32
    return %c0_i32, %c0_i32_0 : i32, i32
  }
  func.func @transform_8(%arg0: i32) -> (i32, i32) {
    %c0_i32 = arith.constant 0 : i32
    %c0_i32_0 = arith.constant 0 : i32
    %c0_i32_1 = arith.constant 0 : i32
    return %c0_i32, %c0_i32_0 : i32, i32
  }
  func.func @transform_9(%arg0: i32) -> (i32, i32) {
    %c0_i32 = arith.constant 0 : i32
    %c0_i32_0 = arith.constant 0 : i32
    %c0_i32_1 = arith.constant 0 : i32
    return %c0_i32, %c0_i32_0 : i32, i32
  }
  func.func @transform_10(%arg0: i32) -> (i32, i32) {
    %c0_i32 = arith.constant 0 : i32
    %c0_i32_0 = arith.constant 0 : i32
    %c0_i32_1 = arith.constant 0 : i32
    return %c0_i32, %c0_i32_0 : i32, i32
  }
  func.func @transform_11(%arg0: i32) -> (i32, i32) {
    %c0_i32 = arith.constant 0 : i32
    %c0_i32_0 = arith.constant 0 : i32
    %c0_i32_1 = arith.constant 0 : i32
    return %c0_i32, %c0_i32_0 : i32, i32
  }
  func.func @transform_12(%arg0: i32) -> (i32, i32) {
    %c0_i32 = arith.constant 0 : i32
    %c0_i32_0 = arith.constant 0 : i32
    %c0_i32_1 = arith.constant 0 : i32
    return %c0_i32, %c0_i32_0 : i32, i32
  }
  func.func @transform_13(%arg0: i32) -> (i32, i32) {
    %c0_i32 = arith.constant 0 : i32
    %c0_i32_0 = arith.constant 0 : i32
    return %arg0, %c0_i32 : i32, i32
  }
}

</mosaic_0001>

<bundles_post_ra>
// kernel: tpu_custom_call.1
= control target key start
LH: loop header
LB: loop body
LE: loop exit
PB: predicated region body
PF: predicated region fallthrough
CT: control target
= control target key end

     0   :  { %s947_s0 = inlined_call_operand.vmem [shape: f32[2,8,64], index: 0, kind: input, shape index: {}]   ;;  %s948_s1 = inlined_call_operand.vmem [shape: f32[64,48], index: 1, kind: input, shape index: {}]   ;;  %s949_s2 = inlined_call_operand.vmem [shape: f32[1,16], index: 2, kind: input, shape index: {}]   ;;  %s950_s3 = inlined_call_operand.vmem [shape: f32[16,24], index: 3, kind: input, shape index: {}]   ;;  %s951_s4 = inlined_call_operand.vmem [shape: f32[1,8], index: 4, kind: input, shape index: {}]   ;;  %s952_s5 = inlined_call_operand.vmem [shape: f32[8,12], index: 5, kind: input, shape index: {}]   ;;  %s953_s6 = inlined_call_operand.vmem [shape: f32[1,4], index: 6, kind: input, shape index: {}]   ;;  %s954_s7 = inlined_call_operand.vmem [shape: f32[4,6], index: 7, kind: input, shape index: {}]   ;;  %s955_s8 = inlined_call_operand.vmem [shape: f32[1,2], index: 8, kind: input, shape index: {}]   ;;  %s956_s9 = inlined_call_operand.vmem [shape: f32[2,3], index: 9, kind: input, shape index: {}]   ;;  %s957_s10 = inlined_call_operand.<no memory space> [shape: f32[1,1], index: 10, kind: input, shape index: {}]   ;;  %s958_s11 = inlined_call_operand.vmem [shape: f32[16,16], index: 11, kind: input, shape index: {}]   ;;  %s959_s12 = inlined_call_operand.vmem [shape: f32[16,1], index: 12, kind: input, shape index: {}]   ;;  %s960_s13 = inlined_call_operand.hbm [shape: f32[2,64], index: 13, kind: output, shape index: {}]  }
   0x1   :  { %v18_v0 = vstv %s957_s10 }
   0x2   :  { %19 = vst [vmem:[#allocation2] sm:$0x1] %v18_v0 }
   0x3   :  { %v87_v1 = vld [vmem:[%s948_s1 + $0x38] sm:$0xff]  ;;  %v86_v2 = vld [vmem:[%s948_s1 + $0x30] sm:$0xff]  ;;  %v85_v3 = vld [vmem:[%s948_s1 + $0x28] sm:$0xff] }
   0x4   :  { %103 = vmatpush.msra.mxu0 %v87_v1  ;;  %v84_v4 = vld [vmem:[%s948_s1 + $0x20] sm:$0xff] }
   0x6   :  { %104 = vmatpush.msra.mxu0 %v86_v2 }
   0x8   :  { %105 = vmatpush.msra.mxu0 %v85_v3 }
   0x9   :  { %20 = vsyncpa [#allocation4], 0  ;;  %v83_v5 = vld [vmem:[%s948_s1 + $0x18] sm:$0xff]  ;;  %v82_v6 = vld [vmem:[%s948_s1 + $0x10] sm:$0xff]  ;;  %vm88_vm0 = vcmask 523264   ;;  %s657_s29 = smov 96   ;;  %v49_v12 = vlaneseq }
   0xa   :  { %106 = vmatpush.msra.mxu0 %v84_v4  ;;  %v81_v7 = vld [vmem:[%s948_s1 + $0x8] sm:$0xff]  ;;  %v80_v8 = vld [vmem:[%s948_s1] sm:$0xff]  ;;  %s656_s1 = smov 112   ;;  %vm172_vm8 = vcmask 130048   ;;  %vm245_vm11 = vcmask 64512   ;;  %vm325_vm13 = vcmask 1043456  }
   0xb   :  { %v764_v9 = vld [vmem:[%s947_s0] sm:$0xff]  ;;  %v771_v10 = vld [vmem:[%s947_s0 + $0x8] sm:$0xff]  ;;  %v776_v13 = vshrl.u32 %v49_v12, 7  ;;  %vm318_vm15 = vcmask 31744  }
   0xc   :  { %107 = vmatpush.msra.mxu0 %v83_v5  ;;  %v171_v19 = vld [vmem:[%s950_s3 + $0x8] sm:$0xff]  ;;  %v170_v20 = vld [vmem:[%s950_s3] sm:$0xff]  ;;  %s583_s3 = sshll.u32 %s960_s13, 4  ;;  %s584_s3 = int_to_ptr.hbm [resolvable:$true] %s583_s3 }
   0xd   :  { %vm120_vm1 = vcmp.lt.s32.totalorder %v776_v13, 1  ;;  %193 = vmatpush.msra.mxu1 %v171_v19  ;;  %v51_v23 = vadd.s32 8, %v776_v13  ;;  %v56_v24 = vand.u32 7, %v776_v13  ;;  %vm139_vm4 = vcmp.lt.s32.totalorder %v776_v13, 7  ;;  %v617_v38 = vld [vmem:[%s949_s2] ss:$0 sm:$0xff] }
   0xe   :  { %108 = vmatpush.msra.mxu0 %v82_v6  ;;  %s658_s2 = smov 120   ;;  %v244_v53 = vld [vmem:[%s952_s5] sm:$0xff]  ;;  %v472_v27 = vld [vmem:[%s958_s11 + $0x8] sm:$0xff] }
   0xf   :  { %194 = vmatpush.msra.mxu1 %v170_v20  ;;  %v63_v25 = vand.u32 7, %v51_v23  ;;  %vm792_vm2 = vcmp.eq.s32.totalorder %v56_v24, 0  ;;  %vm796_vm3 = vcmp.eq.s32.totalorder %v56_v24, 7  ;;  %606 = vmatpush.msra.mxu2 %v244_v53  ;;  %v618_v0 = vld [vmem:[%s951_s4] ss:$0 sm:$0xff]  ;;  %s659_s4 = smov 124  }
  0x10   :  { %109 = vmatpush.msra.mxu0 %v81_v7  ;;  %v471_v30 = vld [vmem:[%s958_s11] sm:$0xff]  ;;  %s663_s11 = smov [#allocation3]  }
  0x11   :  { %vm801_vm5 = vcmp.eq.s32.totalorder %v63_v25, 0  ;;  %vm805_vm6 = vcmp.eq.s32.totalorder %v63_v25, 7  ;;  %267 = vmatpush.msrb.mxu1 %v244_v53  ;;  %v473_v31 = vld [vmem:[%s959_s12] sm:$0xff] }
  0x12   :  { %110 = vmatpush.msra.mxu0 %v80_v8 }
  0x13   :  { %592 = vmatmul.msk.f32.vlgmr.msra.gmra.mxu0 %vm88_vm0, %v764_v9 }
  0x1b   :  { %593 = vmatmul.msk.f32.gmra.mxu0 %vm88_vm0, %v771_v10 }
  0x90   :  { %v112_v11 = vpop.f32.mrf.mxu0 }
  0x91   :  { %148 = vrot.lane.b32.xlu1 %v112_v11, %s656_s1  ;;  %131 = vrot.lane.b32.xlu0 %v112_v11, %s657_s29  ;;  %v118_v15 = vrot.slane %v112_v11, 7 }
  0x98   :  { %v115_v14 = vpop.f32.mrf.mxu0 }
  0x99   :  { %v119_v16 = vrot.slane %v115_v14, 7  ;;  %150 = vrot.lane.b32.xlu1 %v115_v14, %s656_s1  ;;  %133 = vrot.lane.b32.xlu0 %v115_v14, %s657_s29 }
  0x9b   :  { %v122_v17 = vsel %vm120_vm1, %v119_v16, %v118_v15  ;;  %v121_v18 = vsel %vm120_vm1, %v118_v15, %v119_v16 }
  0x9c   :  { %v127_v33 = vsel %vm792_vm2, 0.0, %v122_v17  ;;  %v128_v39 = vsel %vm801_vm5, 0.0, %v121_v18 }
 0x103   :  { %v149_v21 = vpop.permute.xlu1 %148  ;;  %v132_v22 = vpop.permute.xlu0 %131 }
 0x104   :  { %v137_v29 = vrot.slane %v132_v22, 1  ;;  %v154_v35 = vadd.f32 %v149_v21, %v127_v33  ;;  %v317_v22 = vld [vmem:[%s954_s7] sm:$0xf] }
 0x105   :  { %598 = vmatpush.msk.msra.mxu3 %vm325_vm13, %v317_v22 }
 0x10b   :  { %v134_v28 = vpop.permute.xlu0 %133  ;;  %v151_v34 = vpop.permute.xlu1 %150 }
 0x10c   :  { %v138_v32 = vrot.slane %v134_v28, 1  ;;  %v155_v42 = vadd.f32 %v151_v34, %v128_v39 }
 0x10e   :  { %v140_v36 = vsel %vm139_vm4, %v137_v29, %v138_v32  ;;  %v141_v37 = vsel %vm139_vm4, %v138_v32, %v137_v29 }
 0x10f   :  { %v146_v40 = vsel %vm796_vm3, 0.0, %v140_v36  ;;  %v147_v41 = vsel %vm805_vm6, 0.0, %v141_v37 }
 0x110   :  { %v156_v43 = vadd.f32 %v154_v35, %v146_v40  ;;  %v157_v44 = vadd.f32 %v155_v42, %v147_v41  ;;  %v619_v41 = vld [vmem:[%s953_s6] ss:$0 sm:$0xff]  ;;  %s660_s6 = smov 126  }
 0x112   :  { %v162_v45 = vadd.f32 %v617_v38, %v156_v43  ;;  %v163_v48 = vadd.f32 %v617_v38, %v157_v44 }
 0x114   :  { %vm164_vm7 = vcmp.gt.f32.partialorder %v162_v45, 0.0  ;;  %v166_v46 = vmul.f32 0.02, %v162_v45  ;;  %v167_v49 = vmul.f32 0.02, %v163_v48  ;;  %vm165_vm9 = vcmp.gt.f32.partialorder %v163_v48, 0.0 }
 0x116   :  { %v168_v47 = vsel %vm164_vm7, %v162_v45, %v166_v46  ;;  %v169_v50 = vsel %vm165_vm9, %v163_v48, %v167_v49  ;;  %vm402_vm9 = vcmask 1041408  }
 0x117   :  { %594 = vmatmul.msk.f32.vlgmr.msra.gmra.mxu1 %vm172_vm8, %v168_v47 }
 0x11f   :  { %595 = vmatmul.msk.f32.gmra.mxu1 %vm172_vm8, %v169_v50 }
 0x194   :  { %v196_v51 = vpop.f32.mrf.mxu1 }
 0x195   :  { %222 = vrot.lane.b32.xlu1 %v196_v51, %s658_s2  ;;  %210 = vrot.lane.b32.xlu2 %v196_v51, %s656_s1  ;;  %v202_v57 = vrot.slane %v196_v51, 7 }
 0x19c   :  { %v199_v52 = vpop.f32.mrf.mxu1 }
 0x19d   :  { %224 = vrot.lane.b32.xlu0 %v199_v52, %s658_s2  ;;  %212 = vrot.lane.b32.xlu2 %v199_v52, %s656_s1  ;;  %v203_v56 = vrot.slane %v199_v52, 7 }
 0x19f   :  { %v205_v60 = vsel %vm120_vm1, %v203_v56, %v202_v57  ;;  %v204_v5 = vsel %vm120_vm1, %v202_v57, %v203_v56  ;;  %v394_v56 = vld [vmem:[%s956_s9] sm:$0x3] }
 0x1a0   :  { %v206_v63 = vsel %vm792_vm2, 0.0, %v205_v60  ;;  %v207_v11 = vsel %vm801_vm5, 0.0, %v204_v5  ;;  %601 = vmatpush.msk.msrb.mxu2 %vm402_vm9, %v394_v56 }
 0x1ef   :  { %v211_v54 = vpop.permute.xlu2 %210 }
 0x1f0   :  { %v216_v59 = vrot.slane %v211_v54, 1 }
 0x1f7   :  { %v213_v55 = vpop.permute.xlu2 %212 }
 0x1f8   :  { %v217_v58 = vrot.slane %v213_v55, 1 }
 0x1fa   :  { %v218_v61 = vsel %vm139_vm4, %v216_v59, %v217_v58  ;;  %v219_v6 = vsel %vm139_vm4, %v217_v58, %v216_v59 }
 0x1fb   :  { %v220_v2 = vsel %vm796_vm3, 0.0, %v218_v61  ;;  %v221_v15 = vsel %vm805_vm6, 0.0, %v219_v6 }
 0x207   :  { %v223_v62 = vpop.permute.xlu1 %222 }
 0x208   :  { %v228_v1 = vadd.f32 %v223_v62, %v206_v63 }
 0x20a   :  { %v230_v3 = vadd.f32 %v228_v1, %v220_v2 }
 0x20c   :  { %v236_v4 = vadd.f32 %v618_v0, %v230_v3 }
 0x20e   :  { %vm238_vm10 = vcmp.gt.f32.partialorder %v236_v4, 0.0  ;;  %v240_v7 = vmul.f32 0.02, %v236_v4 }
 0x20f   :  { %v225_v8 = vpop.permute.xlu0 %224 }
 0x210   :  { %v229_v12 = vadd.f32 %v225_v8, %v207_v11  ;;  %v242_v14 = vsel %vm238_vm10, %v236_v4, %v240_v7  ;;  %v620_v7 = vld [vmem:[%s955_s8] ss:$0 sm:$0xff]  ;;  %s661_s8 = smov 127  }
 0x211   :  { %596 = vmatmul.msk.f32.vlgmr.msrb.gmra.mxu1 %vm245_vm11, %v242_v14 }
 0x212   :  { %v231_v16 = vadd.f32 %v229_v12, %v221_v15 }
 0x214   :  { %v237_v17 = vadd.f32 %v618_v0, %v231_v16 }
 0x216   :  { %vm239_vm12 = vcmp.gt.f32.partialorder %v237_v17, 0.0  ;;  %v241_v18 = vmul.f32 0.02, %v237_v17 }
 0x218   :  { %v243_v19 = vsel %vm239_vm12, %v237_v17, %v241_v18 }
 0x219   :  { %597 = vmatmul.msk.f32.vlgmr.msra.gmra.mxu2 %vm245_vm11, %v243_v19  ;;  %vm395_vm11 = vcmask 15360  }
 0x28e   :  { %v269_v20 = vpop.f32.mrf.mxu1 }
 0x28f   :  { %295 = vrot.lane.b32.xlu1 %v269_v20, %s659_s4  ;;  %283 = vrot.lane.b32.xlu2 %v269_v20, %s658_s2  ;;  %v275_v25 = vrot.slane %v269_v20, 7 }
 0x29c   :  { %v272_v21 = vpop.f32.mrf.mxu2 }
 0x29d   :  { %297 = vrot.lane.b32.xlu2 %v272_v21, %s659_s4  ;;  %285 = vrot.lane.b32.xlu0 %v272_v21, %s658_s2  ;;  %v276_v24 = vrot.slane %v272_v21, 7 }
 0x29f   :  { %v278_v28 = vsel %vm120_vm1, %v276_v24, %v275_v25  ;;  %v277_v34 = vsel %vm120_vm1, %v275_v25, %v276_v24 }
 0x2a0   :  { %v279_v37 = vsel %vm792_vm2, 0.0, %v278_v28  ;;  %v280_v42 = vsel %vm801_vm5, 0.0, %v277_v34 }
 0x2e9   :  { %v284_v23 = vpop.permute.xlu2 %283 }
 0x2ea   :  { %v289_v33 = vrot.slane %v284_v23, 1 }
 0x2f7   :  { %v298_v36 = vpop.permute.xlu2 %297 }
 0x2f8   :  { %v302_v45 = vadd.f32 %v298_v36, %v280_v42 }
 0x301   :  { %v296_v29 = vpop.permute.xlu1 %295 }
 0x302   :  { %v301_v38 = vadd.f32 %v296_v29, %v279_v37 }
 0x30f   :  { %v286_v32 = vpop.permute.xlu0 %285 }
 0x310   :  { %v290_v35 = vrot.slane %v286_v32, 1 }
 0x312   :  { %v291_v39 = vsel %vm139_vm4, %v289_v33, %v290_v35  ;;  %v292_v40 = vsel %vm139_vm4, %v290_v35, %v289_v33 }
 0x313   :  { %v293_v43 = vsel %vm796_vm3, 0.0, %v291_v39  ;;  %v294_v44 = vsel %vm805_vm6, 0.0, %v292_v40 }
 0x314   :  { %v303_v46 = vadd.f32 %v301_v38, %v293_v43  ;;  %v304_v47 = vadd.f32 %v302_v45, %v294_v44  ;;  %v621_v43 = vld [vmem:[#allocation2] ss:$0 sm:$0xff] }
 0x316   :  { %v309_v48 = vadd.f32 %v619_v41, %v303_v46  ;;  %v310_v51 = vadd.f32 %v619_v41, %v304_v47 }
 0x318   :  { %vm311_vm14 = vcmp.gt.f32.partialorder %v309_v48, 0.0  ;;  %v313_v49 = vmul.f32 0.02, %v309_v48  ;;  %v314_v52 = vmul.f32 0.02, %v310_v51  ;;  %vm312_vm7 = vcmp.gt.f32.partialorder %v310_v51, 0.0 }
 0x31a   :  { %v315_v50 = vsel %vm311_vm14, %v309_v48, %v313_v49  ;;  %v316_v53 = vsel %vm312_vm7, %v310_v51, %v314_v52 }
 0x31b   :  { %599 = vmatmul.msk.f32.vlgmr.msra.gmra.mxu3 %vm318_vm15, %v315_v50 }
 0x323   :  { %600 = vmatmul.msk.f32.gmra.mxu3 %vm318_vm15, %v316_v53 }
 0x39e   :  { %v346_v54 = vpop.f32.mrf.mxu3 }
 0x39f   :  { %372 = vrot.lane.b32.xlu2 %v346_v54, %s660_s6  ;;  %360 = vrot.lane.b32.xlu0 %v346_v54, %s659_s4  ;;  %v352_v59 = vrot.slane %v346_v54, 7 }
 0x3a6   :  { %v349_v55 = vpop.f32.mrf.mxu3 }
 0x3a7   :  { %374 = vrot.lane.b32.xlu0 %v349_v55, %s660_s6  ;;  %362 = vrot.lane.b32.xlu1 %v349_v55, %s659_s4  ;;  %v353_v58 = vrot.slane %v349_v55, 7 }
 0x3a9   :  { %v355_v60 = vsel %vm120_vm1, %v353_v58, %v352_v59  ;;  %v354_v0 = vsel %vm120_vm1, %v352_v59, %v353_v58  ;;  %v474_v59 = vld [vmem:[%s959_s12 + $0x8] sm:$0xff]  ;;  %s581_s12 = sshll.u32 %s663_s11, 4  ;;  %s582_s12 = int_to_ptr.vmem [resolvable:$true] %s581_s12 }
 0x3aa   :  { %v356_v2 = vsel %vm792_vm2, 0.0, %v355_v60  ;;  %v357_v8 = vsel %vm801_vm5, 0.0, %v354_v0 }
 0x3f9   :  { %v373_v61 = vpop.permute.xlu2 %372 }
 0x3fa   :  { %v378_v4 = vadd.f32 %v373_v61, %v356_v2 }
 0x411   :  { %v361_v57 = vpop.permute.xlu0 %360 }
 0x412   :  { %v366_v63 = vrot.slane %v361_v57, 1 }
 0x419   :  { %v363_v62 = vpop.permute.xlu1 %362  ;;  %v375_v3 = vpop.permute.xlu0 %374 }
 0x41a   :  { %v367_v1 = vrot.slane %v363_v62, 1  ;;  %v379_v14 = vadd.f32 %v375_v3, %v357_v8 }
 0x41c   :  { %v368_v5 = vsel %vm139_vm4, %v366_v63, %v367_v1  ;;  %v369_v6 = vsel %vm139_vm4, %v367_v1, %v366_v63  ;;  %v662_v63 = vmov 0  }
 0x41d   :  { %v370_v11 = vsel %vm796_vm3, 0.0, %v368_v5  ;;  %v371_v12 = vsel %vm805_vm6, 0.0, %v369_v6  ;;  %615 = vset.pattern.permute.xlu2 %v662_v63  ;;  %616 = vset.pattern.permute.xlu0 %v662_v63 }
 0x41e   :  { %v380_v15 = vadd.f32 %v378_v4, %v370_v11  ;;  %v381_v16 = vadd.f32 %v379_v14, %v371_v12 }
 0x420   :  { %v386_v17 = vadd.f32 %v620_v7, %v380_v15  ;;  %v387_v20 = vadd.f32 %v620_v7, %v381_v16 }
 0x422   :  { %vm388_vm10 = vcmp.gt.f32.partialorder %v386_v17, 0.0  ;;  %v390_v18 = vmul.f32 0.02, %v386_v17  ;;  %v391_v21 = vmul.f32 0.02, %v387_v20  ;;  %vm389_vm12 = vcmp.gt.f32.partialorder %v387_v20, 0.0 }
 0x424   :  { %v392_v19 = vsel %vm388_vm10, %v386_v17, %v390_v18  ;;  %v393_v22 = vsel %vm389_vm12, %v387_v20, %v391_v21 }
 0x425   :  { %602 = vmatmul.msk.f32.vlgmr.msrb.gmra.mxu2 %vm395_vm11, %v392_v19 }
 0x42d   :  { %603 = vmatmul.msk.f32.gmra.mxu2 %vm395_vm11, %v393_v22 }
 0x4a8   :  { %v423_v23 = vpop.f32.mrf.mxu2 }
 0x4a9   :  { %437 = vrot.lane.b32.xlu1 %v423_v23, %s660_s6  ;;  %v429_v25 = vrot.slane %v423_v23, 7 }
 0x4b0   :  { %v426_v24 = vpop.f32.mrf.mxu2 }
 0x4b1   :  { %v430_v28 = vrot.slane %v426_v24, 7  ;;  %449 = vrot.lane.b32.xlu1 %v423_v23, %s661_s8  ;;  %451 = vrot.lane.b32.xlu0 %v426_v24, %s661_s8 }
 0x4b2   :  { %439 = vrot.lane.b32.xlu2 %v426_v24, %s660_s6 }
 0x4b3   :  { %v432_v29 = vsel %vm120_vm1, %v430_v28, %v429_v25  ;;  %v431_v32 = vsel %vm120_vm1, %v429_v25, %v430_v28 }
 0x4b4   :  { %v433_v40 = vsel %vm792_vm2, 0.0, %v432_v29  ;;  %v434_v42 = vsel %vm801_vm5, 0.0, %v431_v32  ;;  %vm574_vm5 = vcmask 517120  }
 0x50c   :  { %v440_v34 = vpop.permute.xlu2 %439 }
 0x50d   :  { %v444_v36 = vrot.slane %v440_v34, 1 }
 0x51b   :  { %v438_v33 = vpop.permute.xlu1 %437 }
 0x51c   :  { %v443_v35 = vrot.slane %v438_v33, 1 }
 0x51e   :  { %v445_v37 = vsel %vm139_vm4, %v443_v35, %v444_v36  ;;  %v446_v38 = vsel %vm139_vm4, %v444_v36, %v443_v35  ;;  %vm571_vm4 = vcmask 1041409  }
 0x51f   :  { %v447_v46 = vsel %vm796_vm3, 0.0, %v445_v37  ;;  %v448_v47 = vsel %vm805_vm6, 0.0, %v446_v38  ;;  %vm504_vm3 = vcmask 7168  }
 0x523   :  { %v450_v39 = vpop.permute.xlu1 %449  ;;  %v452_v41 = vpop.permute.xlu0 %451 }
 0x524   :  { %v455_v44 = vadd.f32 %v450_v39, %v433_v40  ;;  %v456_v45 = vadd.f32 %v452_v41, %v434_v42 }
 0x526   :  { %v457_v48 = vadd.f32 %v455_v44, %v447_v46  ;;  %v458_v13 = vadd.f32 %v456_v45, %v448_v47 }
 0x528   :  { %v463_v49 = vadd.f32 %v621_v43, %v457_v48  ;;  %v464_v50 = vadd.f32 %v621_v43, %v458_v13 }
 0x52a   :  { %vm466_vm1 = vcmp.gt.f32.partialorder %v464_v50, 0.0  ;;  %v468_v26 = vmul.f32 0.02, %v464_v50  ;;  %v467_v51 = vmul.f32 0.02, %v463_v49  ;;  %vm465_vm2 = vcmp.gt.f32.partialorder %v463_v49, 0.0 }
 0x52c   :  { %v470_v52 = vsel %vm466_vm1, %v464_v50, %v468_v26  ;;  %v469_v53 = vsel %vm465_vm2, %v463_v49, %v467_v51 }
 0x52d   :  { %495 = vmatpush.msrb.mxu3 %v470_v52 }
 0x52f   :  { %496 = vmatpush.msrb.mxu3 %v469_v53 }
 0x530   :  { %604 = vmatmul.msk.f32.vlgmr.msrb.gmra.mxu3 %vm172_vm8, %v471_v30 }
 0x538   :  { %605 = vmatmul.msk.f32.gmra.mxu3 %vm172_vm8, %v472_v27 }
 0x5b3   :  { %v498_v54 = vpop.f32.mrf.mxu3 }
 0x5b4   :  { %v499_v55 = vadd.f32 %v498_v54, %v473_v31 }
 0x5b6   :  { %v505_v56 = vsel %vm504_vm3, %v499_v55, -inf }
 0x5b7   :  { %v506_v57 = vrot.slane %v505_v56, 4 }
 0x5b9   :  { %v507_v58 = vmax.f32 %v505_v56, %v506_v57 }
 0x5bb   :  { %v508_v60 = vrot.slane %v507_v58, 2  ;;  %v501_v61 = vpop.f32.mrf.mxu3 }
 0x5bc   :  { %v502_v62 = vadd.f32 %v501_v61, %v474_v59 }
 0x5bd   :  { %v509_v0 = vmax.f32 %v507_v58, %v508_v60 }
 0x5be   :  { %v512_v1 = vsel %vm504_vm3, %v502_v62, -inf }
 0x5bf   :  { %v510_v2 = vrot.slane %v509_v0, 1  ;;  %v513_v3 = vrot.slane %v512_v1, 4 }
 0x5c1   :  { %v511_v4 = vmax.f32 %v509_v0, %v510_v2  ;;  %v514_v5 = vmax.f32 %v512_v1, %v513_v3 }
 0x5c3   :  { %v519_v6 = vsub.f32 %v499_v55, %v511_v4  ;;  %v515_v7 = vrot.slane %v514_v5, 2 }
 0x5c5   :  { %v521_v8 = vmul.f32 1.442695, %v519_v6  ;;  %v516_v11 = vmax.f32 %v514_v5, %v515_v7 }
 0x5c7   :  { %622 = vpow2.f32 %v521_v8  ;;  %v517_v12 = vrot.slane %v516_v11, 1 }
 0x5c9   :  { %v518_v14 = vmax.f32 %v516_v11, %v517_v12 }
 0x5cb   :  { %v520_v15 = vsub.f32 %v502_v62, %v518_v14 }
 0x5cd   :  { %v623_v16 = vpop.eup %622  ;;  %v523_v17 = vmul.f32 1.442695, %v520_v15 }
 0x5ce   :  { %v525_v18 = vsel %vm504_vm3, %v623_v16, 0.0 }
 0x5cf   :  { %v526_v19 = vrot.slane %v525_v18, 4  ;;  %624 = vpow2.f32 %v523_v17 }
 0x5d1   :  { %v527_v20 = vadd.f32 %v526_v19, %v525_v18 }
 0x5d3   :  { %v528_v21 = vrot.slane %v527_v20, 2 }
 0x5d5   :  { %v625_v22 = vpop.eup %624  ;;  %v529_v23 = vadd.f32 %v528_v21, %v527_v20 }
 0x5d6   :  { %v532_v24 = vsel %vm504_vm3, %v625_v22, 0.0 }
 0x5d7   :  { %v533_v25 = vrot.slane %v532_v24, 4  ;;  %v530_v28 = vrot.slane %v529_v23, 1 }
 0x5d9   :  { %v534_v29 = vadd.f32 %v533_v25, %v532_v24  ;;  %v531_v32 = vadd.f32 %v530_v28, %v529_v23 }
 0x5db   :  { %v535_v33 = vrot.slane %v534_v29, 2  ;;  %626 = vrcp.f32 %v531_v32 }
 0x5dd   :  { %v536_v34 = vadd.f32 %v535_v33, %v534_v29 }
 0x5df   :  { %v537_v35 = vrot.slane %v536_v34, 1 }
 0x5e1   :  { %v627_v36 = vpop.eup %626  ;;  %v538_v37 = vadd.f32 %v537_v35, %v536_v34 }
 0x5e2   :  { %v541_v38 = vmul.f32 %v627_v36, %v623_v16 }
 0x5e3   :  { %628 = vrcp.f32 %v538_v37 }
 0x5e4   :  { %545 = vperm.xlu2 %615, %v541_v38  }
 0x5e9   :  { %v629_v39 = vpop.eup %628 }
 0x5ea   :  { %v542_v40 = vmul.f32 %v629_v39, %v625_v22 }
 0x5ec   :  { %550 = vperm.xlu0 %616, %v542_v40  }
 0x63e   :  { %v546_v41 = vpop.permute.xlu2 %545 }
 0x63f   :  { %v553_v42 = vmul.f32 %v546_v41, %v764_v9 }
 0x641   :  { %v555_v43 = vsel %vm88_vm0, %v553_v42, 0.0 }
 0x642   :  { %v556_v44 = vrot.slane %v555_v43, 4 }
 0x644   :  { %v557_v45 = vadd.f32 %v556_v44, %v555_v43 }
 0x646   :  { %v558_v48 = vrot.slane %v557_v45, 2 }
 0x648   :  { %v559_v50 = vadd.f32 %v558_v48, %v557_v45 }
 0x64a   :  { %v560_v52 = vrot.slane %v559_v50, 1 }
 0x64c   :  { %v561_v9 = vadd.f32 %v560_v52, %v559_v50 }
 0x65e   :  { %v551_v46 = vpop.permute.xlu0 %550 }
 0x65f   :  { %v554_v47 = vmul.f32 %v551_v46, %v771_v10 }
 0x661   :  { %v562_v13 = vsel %vm88_vm0, %v554_v47, 0.0 }
 0x662   :  { %v563_v49 = vrot.slane %v562_v13, 4 }
 0x664   :  { %v564_v26 = vadd.f32 %v563_v49, %v562_v13 }
 0x666   :  { %v565_v51 = vrot.slane %v564_v26, 2 }
 0x668   :  { %v566_v30 = vadd.f32 %v565_v51, %v564_v26 }
 0x66a   :  { %v567_v53 = vrot.slane %v566_v30, 1 }
 0x66c   :  { %v568_v27 = vadd.f32 %v567_v53, %v566_v30 }
 0x66e   :  { %v572_v10 = vsel %vm571_vm4, %v568_v27, %v561_v9 }
 0x66f   :  { %575 = vst.msk [vmem:[#allocation3] sm:$0x3] %vm574_vm5, %v572_v10 }
 0x670   :  { %586 = dma.vmem_to_hbm [thread:$0]  %s582_s12, 32, %s584_s3, [#allocation4]  }
 0x671   :  { %654 = dma.done.wait [#allocation4], 32  }
 0x672   :  { %655 = vsyncadd [#allocation4], 4294967264 }
 0x673   :  { %591 = vsyncpa [#allocation4], 1 }

</bundles_post_ra>
